<compile_context>
chip_gen: v5e
topology: v5e:2x2
jax: 0.10.0
libtpu: 0.0.40
codegen_flags: <defaults>
</compile_context>

<pallas_src>
import functools

import jax
import jax.numpy as jnp
from jax import lax
from jax.experimental import pallas as pl
from jax.experimental.pallas import tpu as pltpu


def _round_up(x, m):
    return (x + m - 1) // m * m


def _vmem_capacity_bytes():
    """Best-effort per-core VMEM capacity; conservative (v7x) fallback."""
    try:
        info = pltpu.get_tpu_info()
        cap = getattr(info, "vmem_capacity_bytes", None)
        if cap:
            return int(cap)
    except Exception:
        pass
    return 64 * 1024 * 1024


def _partial_moments_kernel(bs, views_ref, x_ref, cmean_ref,
                            sum_ref, sumsq_ref):
    """One grid step: per-view sums / sums-of-squares of (x - center_mean)
    for this batch tile.  No cross-step carry -> the BS axis is 'parallel'
    (megacore-splittable on v7x)."""
    step = pl.program_id(0)
    tile = x_ref.shape[0]
    v_pad = sum_ref.shape[0]

    # cast native-dtype tile to f32 and shift by the resident center_mean
    xs = x_ref[...].astype(jnp.float32) - cmean_ref[...]          # (Bt, C)

    # rows past the true batch size (overhang of the last tile) hold stale
    # VMEM data; select them to 0 so garbage / NaNs never reach the matmul
    row_ids = step * tile + lax.broadcasted_iota(jnp.int32, (tile, 1), 0)
    xs = jnp.where(row_ids < bs, xs, 0.0)

    # one-hot view membership built in-registers (padded views carry -1)
    view_ids = lax.broadcasted_iota(jnp.int32, (v_pad, tile), 0)  # (Vp, Bt)
    mask = (views_ref[...] == view_ids).astype(jnp.float32)       # (Vp, Bt)

    sum_ref[...] = jnp.dot(mask, xs, preferred_element_type=jnp.float32)
    sumsq_ref[...] = jnp.dot(mask, xs * xs, preferred_element_type=jnp.float32)


def multilabel_loss(log_multilabels, views, center_mean, center_std,
                    *, num_views, moment, use_std=True, tile_rows=None):
    """Pallas version of MultilabelLoss.forward.

    Args:
      log_multilabels: (BS, n_class) float (any float dtype; NOT upcast here)
      views: (BS,) int view ids in [0, num_views)
      center_mean, center_std: (n_class,) running buffers
      tile_rows: optional batch-tile override (rounded up to 128), for testing.
    Returns:
      (loss scalar, updated center_mean, updated center_std)
    """
    bs, c = log_multilabels.shape
    x = log_multilabels                      # native dtype, no HBM copy
    views = views.astype(jnp.int32)
    cm = center_mean.reshape(1, c).astype(jnp.float32)

    v_pad = _round_up(num_views, 8)
    dtype_bytes = x.dtype.itemsize
    row_bytes = c * dtype_bytes

    cap = _vmem_capacity_bytes()
    budget = max(int(0.6 * cap), 24 * 1024 * 1024)      # generation-aware cap
    target_block = (4 << 20) if cap >= 100 * 1024 * 1024 else (2 << 20)

    # batch tile sized by block bytes; multiple of 128 rows when BS is tiled
    tile = max(128, (target_block // max(row_bytes, 1)) // 128 * 128)
    max_rows = max(128, (budget // 4) // max(row_bytes, 1) // 128 * 128)
    tile = min(tile, max_rows)
    if tile_rows is not None:
        tile = max(128, _round_up(int(tile_rows), 128))
    if bs <= tile:
        tile = bs                                        # single block, no pad
    n_steps = -(-bs // tile)
    padded = n_steps * tile

    views_p = views
    if padded != bs:
        # only the tiny views vector is padded; x is NOT copied/padded
        views_p = jnp.pad(views, (0, padded - bs), constant_values=-1)
    views2d = views_p.reshape(1, padded)

    # double-buffered footprint (x dominates); never clamp BELOW requirement,
    # then cap by the per-generation budget
    est = (2 * tile * c * dtype_bytes          # x blocks (double-buffered)
           + 2 * 8 * tile * 4                  # views blocks (sublane-padded)
           + 2 * 8 * c * 4                     # resident center_mean
           + 2 * 2 * v_pad * c * 4)            # two output blocks
    vmem_limit = int(min(max(2 * est + (4 << 20), 16 << 20), budget))

    kernel = functools.partial(_partial_moments_kernel, bs)

    part_sum, part_sumsq = pl.pallas_call(
        kernel,
        out_shape=(jax.ShapeDtypeStruct((n_steps, v_pad, c), jnp.float32),
                   jax.ShapeDtypeStruct((n_steps, v_pad, c), jnp.float32)),
        grid_spec=pltpu.PrefetchScalarGridSpec(
            num_scalar_prefetch=0,
            grid=(n_steps,),
            in_specs=[
                pl.BlockSpec((1, tile), lambda i: (0, i)),    # views tile
                pl.BlockSpec((tile, c), lambda i: (i, 0)),    # x tile (native dtype)
                pl.BlockSpec((1, c), lambda i: (0, 0)),       # center_mean (resident)
            ],
            out_specs=(
                pl.BlockSpec((None, v_pad, c), lambda i: (i, 0, 0)),
                pl.BlockSpec((None, v_pad, c), lambda i: (i, 0, 0)),
            )),
        compiler_params=pltpu.CompilerParams(
            dimension_semantics=("parallel",),   # no carry -> both TCs on v7x
            vmem_limit_bytes=vmem_limit),
    )(views2d, x, cm)

    # ---- tiny O(V*C) finalize in plain JAX (per perf review) ----
    sums = jnp.sum(part_sum, axis=0)[:num_views]        # (V, C) shifted sums
    sumsqs = jnp.sum(part_sumsq, axis=0)[:num_views]    # (V, C) shifted sumsq
    counts = jnp.sum(
        (views[:, None] == jnp.arange(num_views, dtype=jnp.int32)[None, :]
         ).astype(jnp.float32), axis=0)[:, None]        # (V, 1)

    cm1 = center_mean.astype(jnp.float32)
    cs1 = center_std.astype(jnp.float32)

    safe_n = jnp.maximum(counts, 1.0)
    mean_s = sums / safe_n                               # shifted per-view mean
    mean_v = mean_s + cm1[None, :]
    # unbiased (ddof=1) variance about the center_mean shift (stable)
    var_v = (sumsqs - counts * mean_s * mean_s) / jnp.maximum(counts - 1.0, 1.0)
    std_v = jnp.sqrt(jnp.maximum(var_v, 0.0))

    valid = (counts >= 2.0).astype(jnp.float32)          # <2 samples -> skipped
    n_valid = jnp.maximum(jnp.sum(valid), 1.0)

    new_mean = jnp.sum(mean_v * valid, axis=0) / n_valid
    upd_mean = cm1 * (1.0 - moment) + new_mean * moment
    if use_std:
        new_std = jnp.sum(std_v * valid, axis=0) / n_valid
        upd_std = cs1 * (1.0 - moment) + new_std * moment
    else:
        upd_std = cs1                                    # frozen, as in the module

    dm = mean_v - upd_mean[None, :]
    ds = std_v - upd_std[None, :]
    per_view = jnp.sum(dm * dm + ds * ds, axis=1, keepdims=True)   # (V, 1)
    loss = jnp.sum(per_view * valid) / (2.0 * n_valid)
    return loss, upd_mean, upd_std


def _reference(x, views, cm, cs, moment, use_std=True):
    """Pure-JAX reference mirroring the PyTorch module (eager, python loop)."""
    present = sorted(set(int(v) for v in views.tolist()))
    means, stds = [], []
    for v in present:
        xv = x[views == v]
        if xv.shape[0] == 1:
            continue
        means.append(xv.mean(axis=0))
        stds.append(xv.std(axis=0, ddof=1))
    new_mean = jnp.stack(means).mean(axis=0)
    cm2 = cm * (1 - moment) + new_mean * moment
    if use_std:
        new_std = jnp.stack(stds).mean(axis=0)
        cs2 = cs * (1 - moment) + new_std * moment
    else:
        cs2 = cs
    terms = []
    for m, s in zip(means, stds):
        terms.append(((m - cm2) ** 2).sum())
        terms.append(((s - cs2) ** 2).sum())
    return jnp.stack(terms).mean(), cm2, cs2


if __name__ == "__main__":
    C, V = 32, 8
    key = jax.random.PRNGKey(0)
    k_cm, k_cs, k1, k2, k3, kv = jax.random.split(key, 6)

    center_mean = (jax.random.normal(k_cm, (C,), dtype=jnp.float32) * 0.1)
    center_std = (jnp.abs(jax.random.normal(k_cs, (C,), dtype=jnp.float32)) * 0.1
                  + 1.0)

    def run_case(x, views, tile_rows=None):
        bs = x.shape[0]
        moment = bs / 10000.0
        out = multilabel_loss(x, views, center_mean, center_std,
                              num_views=V, moment=moment, use_std=True,
                              tile_rows=tile_rows)
        out = jax.block_until_ready(out)
        ref = _reference(x.astype(jnp.float32), views, center_mean, center_std,
                         moment)
        for got, want in zip(out, ref):
            assert jnp.allclose(got, want, rtol=1e-4, atol=1e-5), (got, want)
        return out

    # 1) basic case: BS=8, all views with 2 samples, single block
    x1 = jax.random.normal(k1, (8, C), dtype=jnp.float32)
    v1 = jnp.array([0, 0, 1, 1, 2, 2, 3, 3], dtype=jnp.int32)
    loss1, _, _ = run_case(x1, v1)

    # 2) non-8-aligned batch + a singleton view (skipped, like the `continue`)
    x2 = jax.random.normal(k2, (12, C), dtype=jnp.float32)
    v2 = jnp.array([0, 0, 0, 1, 1, 2, 2, 2, 2, 3, 3, 4], dtype=jnp.int32)
    run_case(x2, v2)

    # 3) multi-tile grid with an overhanging last block (BS=200, tile=128)
    x3 = jax.random.normal(k3, (200, C), dtype=jnp.float32)
    v3 = jax.random.randint(kv, (200,), 0, V, dtype=jnp.int32)
    run_case(x3, v3, tile_rows=128)

    # 4) native bf16 input path (half the x DMA bytes); sanity check only
    loss_bf, _, _ = jax.block_until_ready(
        multilabel_loss(x1.astype(jnp.bfloat16), v1, center_mean, center_std,
                        num_views=V, moment=8 / 10000.0, use_std=True))
    assert bool(jnp.isfinite(loss_bf))
    assert abs(float(loss_bf) - float(loss1)) < 0.1 * abs(float(loss1)) + 0.1

    print("KERNEL_OK")
</pallas_src>

<mosaic_0001>
module attributes {stable_mosaic.version = 11 : i64} {
  func.func @_partial_moments_kernel(%arg0: i32, %arg1: memref<1x8xi32, #tpu.memory_space<vmem>>, %arg2: memref<8x32xf32, #tpu.memory_space<vmem>>, %arg3: memref<1x32xf32, #tpu.memory_space<vmem>>, %arg4: memref<1x8x32xf32, #tpu.memory_space<vmem>>, %arg5: memref<1x8x32xf32, #tpu.memory_space<vmem>>) attributes {dimension_semantics = [#tpu.dimension_semantics<parallel>], iteration_bounds = array<i64: 1>, scalar_prefetch = 0 : i64, scratch_operands = 0 : i64, tpu.core_type = #tpu.core_type<tc>, window_params = [{transform_indices = @transform_0, window_bounds = array<i64: 1, 8>}, {transform_indices = @transform_1, window_bounds = array<i64: 8, 32>}, {pipeline_mode = #tpu.pipeline_mode<synchronous>, transform_indices = @transform_2, window_bounds = array<i64: 1, 32>}, {transform_indices = @transform_3, window_bounds = array<i64: 1, 8, 32>}, {transform_indices = @transform_4, window_bounds = array<i64: 1, 8, 32>}]} {
    %c0 = arith.constant 0 : index
    %c0_0 = arith.constant 0 : index
    %0 = vector.load %arg2[%c0, %c0_0] : memref<8x32xf32, #tpu.memory_space<vmem>>, vector<8x32xf32>
    %c0_1 = arith.constant 0 : index
    %c0_2 = arith.constant 0 : index
    %1 = vector.load %arg3[%c0_1, %c0_2] : memref<1x32xf32, #tpu.memory_space<vmem>>, vector<1x32xf32>
    %2 = vector.broadcast %1 : vector<1x32xf32> to vector<8x32xf32>
    %3 = arith.subf %0, %2 : vector<8x32xf32>
    %c8_i32 = arith.constant 8 : i32
    %4 = arith.muli %arg0, %c8_i32 : i32
    %5 = tpu.iota {dimensions = array<i32: 0>} : vector<8x1xi32>
    %6 = vector.broadcast %4 : i32 to vector<8x1xi32>
    %7 = arith.addi %6, %5 : vector<8x1xi32>
    %c8_i32_3 = arith.constant 8 : i32
    %8 = vector.broadcast %c8_i32_3 : i32 to vector<8x1xi32>
    %9 = arith.cmpi slt, %7, %8 : vector<8x1xi32>
    %cst = arith.constant 0.000000e+00 : f32
    %10 = vector.shape_cast %9 : vector<8x1xi1> to vector<8x1xi1>
    %11 = vector.broadcast %10 : vector<8x1xi1> to vector<8x32xi1>
    %12 = vector.broadcast %cst : f32 to vector<8x32xf32>
    %13 = arith.select %11, %3, %12 : vector<8x32xi1>, vector<8x32xf32>
    %14 = tpu.iota {dimensions = array<i32: 0>} : vector<8x8xi32>
    %c0_4 = arith.constant 0 : index
    %c0_5 = arith.constant 0 : index
    %15 = vector.load %arg1[%c0_4, %c0_5] : memref<1x8xi32, #tpu.memory_space<vmem>>, vector<1x8xi32>
    %16 = vector.broadcast %15 : vector<1x8xi32> to vector<8x8xi32>
    %17 = arith.cmpi eq, %16, %14 : vector<8x8xi32>
    %18 = arith.extui %17 : vector<8x8xi1> to vector<8x8xi32>
    %19 = arith.sitofp %18 : vector<8x8xi32> to vector<8x8xf32>
    %cst_6 = arith.constant dense<0.000000e+00> : vector<8x32xf32>
    %20 = tpu.matmul %19, %13, %cst_6 {dimension_numbers = #tpu.dot_dimension_numbers<[1], [0], [0], [1], [0, 0, 1, 1], [], []>} : vector<8x8xf32>, vector<8x32xf32>, vector<8x32xf32> -> vector<8x32xf32>
    %c0_7 = arith.constant 0 : index
    %c0_8 = arith.constant 0 : index
    %c0_9 = arith.constant 0 : index
    %21 = vector.load %arg4[%c0_7, %c0_8, %c0_9] : memref<1x8x32xf32, #tpu.memory_space<vmem>>, vector<1x8x32xf32>
    %22 = vector.shape_cast %21 : vector<1x8x32xf32> to vector<8x32xf32>
    %23 = vector.shape_cast %20 : vector<8x32xf32> to vector<1x8x32xf32>
    tpu.vector_store %arg4[%c0_7, %c0_8, %c0_9], %23 {strides = array<i32>} : memref<1x8x32xf32, #tpu.memory_space<vmem>>, vector<1x8x32xf32>,
    %24 = arith.mulf %13, %13 : vector<8x32xf32>
    %cst_10 = arith.constant dense<0.000000e+00> : vector<8x32xf32>
    %25 = tpu.matmul %19, %24, %cst_10 {dimension_numbers = #tpu.dot_dimension_numbers<[1], [0], [0], [1], [0, 0, 1, 1], [], []>} : vector<8x8xf32>, vector<8x32xf32>, vector<8x32xf32> -> vector<8x32xf32>
    %c0_11 = arith.constant 0 : index
    %c0_12 = arith.constant 0 : index
    %c0_13 = arith.constant 0 : index
    %26 = vector.load %arg5[%c0_11, %c0_12, %c0_13] : memref<1x8x32xf32, #tpu.memory_space<vmem>>, vector<1x8x32xf32>
    %27 = vector.shape_cast %26 : vector<1x8x32xf32> to vector<8x32xf32>
    %28 = vector.shape_cast %25 : vector<8x32xf32> to vector<1x8x32xf32>
    tpu.vector_store %arg5[%c0_11, %c0_12, %c0_13], %28 {strides = array<i32>} : memref<1x8x32xf32, #tpu.memory_space<vmem>>, vector<1x8x32xf32>,
    return
  }
  func.func @transform_0(%arg0: i32) -> (i32, i32) {
    %c0_i32 = arith.constant 0 : i32
    %c0_i32_0 = arith.constant 0 : i32
    return %c0_i32, %arg0 : i32, i32
  }
  func.func @transform_1(%arg0: i32) -> (i32, i32) {
    %c0_i32 = arith.constant 0 : i32
    %c0_i32_0 = arith.constant 0 : i32
    return %arg0, %c0_i32 : i32, i32
  }
  func.func @transform_2(%arg0: i32) -> (i32, i32) {
    %c0_i32 = arith.constant 0 : i32
    %c0_i32_0 = arith.constant 0 : i32
    %c0_i32_1 = arith.constant 0 : i32
    return %c0_i32, %c0_i32_0 : i32, i32
  }
  func.func @transform_3(%arg0: i32) -> (i32, i32, i32) {
    %c0_i32 = arith.constant 0 : i32
    %c0_i32_0 = arith.constant 0 : i32
    %c0_i32_1 = arith.constant 0 : i32
    return %arg0, %c0_i32, %c0_i32_0 : i32, i32, i32
  }
  func.func @transform_4(%arg0: i32) -> (i32, i32, i32) {
    %c0_i32 = arith.constant 0 : i32
    %c0_i32_0 = arith.constant 0 : i32
    %c0_i32_1 = arith.constant 0 : i32
    return %arg0, %c0_i32, %c0_i32_0 : i32, i32, i32
  }
}

</mosaic_0001>

<bundles_post_ra>
// kernel: tpu_custom_call.1
= control target key start
LH: loop header
LB: loop body
LE: loop exit
PB: predicated region body
PF: predicated region fallthrough
CT: control target
= control target key end

     0   :  { %10 = vsyncpa [#allocation3], 0  ;;  %s307_s0 = inlined_call_operand.hbm [shape: s32[1,8], index: 0, kind: input, shape index: {}]   ;;  %s308_s1 = inlined_call_operand.hbm [shape: f32[8,32], index: 1, kind: input, shape index: {}]   ;;  %s309_s2 = inlined_call_operand.vmem [shape: f32[1,32], index: 2, kind: input, shape index: {}]   ;;  %s310_s3 = inlined_call_operand.hbm [shape: f32[1,8,32], index: 3, kind: output, shape index: {0}]   ;;  %s311_s4 = inlined_call_operand.hbm [shape: f32[1,8,32], index: 4, kind: output, shape index: {1}]  }
   0x1   :  { %11 = vsyncpa [#allocation6], 0 }
   0x2   :  { %12 = vsyncpa [#allocation4], 0 }
   0x3   :  { %13 = vsyncpa [#allocation9], 0  ;;  %s19_s17 = sshll.u32 %s307_s0, 4  ;;  %s262_s18 = smov [#allocation2]   ;;  %s20_s17 = int_to_ptr.hbm [resolvable:$true] %s19_s17 }
   0x4   :  { %s21_s19 = sshll.u32 %s262_s18, 4  ;;  %s30_s22 = sshll.u32 %s308_s1, 4  ;;  %s22_s19 = int_to_ptr.vmem [resolvable:$true] %s21_s19  ;;  %s31_s22 = int_to_ptr.hbm [resolvable:$true] %s30_s22 }
   0x5   :  { %24 = dma.hbm_to_vmem [thread:$0]  %s20_s17, 16, %s22_s19, [#allocation3]  }
   0x6   :  { %s263_s23 = smov [#allocation5]  }
   0x7   :  { %s32_s24 = sshll.u32 %s263_s23, 4  ;;  %s33_s24 = int_to_ptr.vmem [resolvable:$true] %s32_s24 }
   0x8   :  { %35 = dma.hbm_to_vmem [thread:$0]  %s31_s22, 128, %s33_s24, [#allocation6]  }
   0x9   :  { %254 = dma.done.wait [#allocation3], 16  }
   0xa   :  { %255 = vsyncadd [#allocation3], 4294967280 }
   0xb   :  { %256 = dma.done.wait [#allocation6], 128  }
   0xc   :  { %257 = vsyncadd [#allocation6], 4294967168  ;;  %v53_v0 = vlaneseq  ;;  %v46_v2 = vld [vmem:[#allocation5] sm:$0xff]  ;;  %v156_v3 = vld [vmem:[%s309_s2] ss:$0 sm:$0xff]  ;;  %vm66_vm0 = vcmask 64512  }
   0xd   :  { %v157_v4 = vld [vmem:[#allocation2] ss:$0 sm:$0xff]  ;;  %v51_v5 = vsub.f32 %v46_v2, %v156_v3  ;;  %v264_v7 = vmov 0.0   ;;  %s265_s1 = smov [#allocation7]   ;;  %s121_s29 = sshll.u32 %s310_s3, 4  ;;  %vm90_vm2 = vcmask 261120   ;;  %s122_s29 = int_to_ptr.hbm [resolvable:$true] %s121_s29 }
   0xe   :  { %v54_v1 = vshrl.u32 %v53_v0, 7  ;;  %s119_s26 = sshll.u32 %s265_s1, 4  ;;  %s266_s30 = smov [#allocation8]   ;;  %s120_s26 = int_to_ptr.vmem [resolvable:$true] %s119_s26 }
   0xf   :  { %85 = vmatpush.msra.mxu0 %v51_v5  ;;  %v92_v6 = vmul.f32 %v51_v5, %v51_v5  ;;  %s130_s2 = sshll.u32 %s266_s30, 4  ;;  %s132_s7 = sshll.u32 %s311_s4, 4  ;;  %s131_s2 = int_to_ptr.vmem [resolvable:$true] %s130_s2  ;;  %s133_s7 = int_to_ptr.hbm [resolvable:$true] %s132_s7 }
  0x10   :  { %vm63_vm1 = vcmp.eq.s32.totalorder %v157_v4, %v54_v1 }
  0x11   :  { %v148_v8 = vsel %vm63_vm1, 1.0, %v264_v7  ;;  %108 = vmatpush.msra.mxu1 %v92_v6 }
  0x12   :  { %149 = vmatmul.msk.f32.vlgmr.msra.gmra.mxu0 %vm66_vm0, %v148_v8  ;;  %150 = vmatmul.msk.f32.vlgmr.msra.gmra.mxu1 %vm66_vm0, %v148_v8 }
  0x8f   :  { %v87_v9 = vpop.f32.mrf.mxu0  ;;  %v110_v10 = vpop.f32.mrf.mxu1 }
  0x90   :  { %91 = vst.msk [vmem:[#allocation7] sm:$0xff] %vm90_vm2, %v87_v9 }
  0x91   :  { %124 = dma.vmem_to_hbm [thread:$0]  %s120_s26, 128, %s122_s29, [#allocation4]   ;;  %113 = vst.msk [vmem:[#allocation8] sm:$0xff] %vm90_vm2, %v110_v10 }
  0x92   :  { %135 = dma.vmem_to_hbm [thread:$0]  %s131_s2, 128, %s133_s7, [#allocation9]  }
  0x93   :  { %258 = dma.done.wait [#allocation4], 128  }
  0x94   :  { %259 = vsyncadd [#allocation4], 4294967168 }
  0x95   :  { %260 = dma.done.wait [#allocation9], 128  }
  0x96   :  { %261 = vsyncadd [#allocation9], 4294967168 }
  0x97   :  { %144 = vsyncpa [#allocation3], 1 }
  0x98   :  { %145 = vsyncpa [#allocation6], 1 }
  0x99   :  { %146 = vsyncpa [#allocation4], 1 }
  0x9a   :  { %147 = vsyncpa [#allocation9], 1 }

</bundles_post_ra>
